<compile_context>
chip_gen: v5e
topology: v5e:2x2
jax: 0.10.0
libtpu: 0.0.40
codegen_flags: <defaults>
</compile_context>

<pallas_src>
import jax
import jax.numpy as jnp
from jax import lax
from jax.experimental import pallas as pl
from jax.experimental.pallas import tpu as pltpu

_HIGH = lax.Precision.HIGHEST
_EPS = 1e-6


# ----------------------------- Pallas kernel -------------------------------

def _fused_fwd_kernel(x_ref, wconv_ref, bconv_ref, pool_ref, wclf_ref,
                      bclf_ref, o_ref):
    """Whole FcClfNet forward for one batch tile, entirely in VMEM/vregs.

    x_ref     : (TB, C*T)             flattened input rows
    wconv_ref : (C*T, F2*Tconv)       Toeplitz-structured fused conv weight
    bconv_ref : (1,  F2*Tconv)        fused conv bias (replicated over time)
    pool_ref  : (F2*Tconv, F2*Tpool)  block-diagonal avg-pool matrix (1/P)
    wclf_ref  : (F2*Tpool, n_cls)     classifier weight, transposed
    bclf_ref  : (1, n_cls)            classifier bias
    o_ref     : (TB, n_cls)           logits
    """
    x = x_ref[...]
    # conv_time ∘ conv_spat fused into one MXU matmul (Toeplitz weight).
    h = jnp.dot(x, wconv_ref[...], preferred_element_type=jnp.float32)
    h = h + bconv_ref[...]
    # square -> average pool (matmul on data already in vregs) -> log.
    s = h * h
    pooled = jnp.dot(s, pool_ref[...], preferred_element_type=jnp.float32)
    feat = jnp.log(pooled + _EPS)
    # Classifier Linear.  Dropout is identity in eval mode.
    logits = jnp.dot(feat, wclf_ref[...], preferred_element_type=jnp.float32)
    o_ref[...] = (logits + bclf_ref[...]).astype(o_ref.dtype)


def fused_forward(x2d, fp):
    """x2d: (B, C*T) float32 -> logits (B, n_classes) float32, one pallas_call."""
    B, D1 = x2d.shape
    wconv, bconv, pool, wclf_t, bclf = (fp["wconv"], fp["bconv"], fp["pool"],
                                        fp["wclf_t"], fp["bclf"])
    D2 = wconv.shape[1]
    D3 = pool.shape[1]
    N = wclf_t.shape[1]

    # Row (batch) tiling: full-array block at toy sizes; 128-row tiles (8-
    # divisible) once the batch grows, with a "parallel" grid axis so v7x's
    # two TensorCores both get work.
    TB = B if B <= 128 else 128
    nblk = pl.cdiv(B, TB)
    Bp = TB * nblk
    if Bp != B:
        x2d = jnp.pad(x2d, ((0, Bp - B), (0, 0)))

    out = pl.pallas_call(
        _fused_fwd_kernel,
        out_shape=jax.ShapeDtypeStruct((Bp, N), jnp.float32),
        grid=(nblk,),
        in_specs=[
            pl.BlockSpec((TB, D1), lambda i: (i, 0)),
            pl.BlockSpec((D1, D2), lambda i: (0, 0)),   # weights stay resident
            pl.BlockSpec((1, D2), lambda i: (0, 0)),
            pl.BlockSpec((D2, D3), lambda i: (0, 0)),
            pl.BlockSpec((D3, N), lambda i: (0, 0)),
            pl.BlockSpec((1, N), lambda i: (0, 0)),
        ],
        out_specs=pl.BlockSpec((TB, N), lambda i: (i, 0)),
        compiler_params=pltpu.CompilerParams(
            dimension_semantics=("parallel",)),
    )(x2d, wconv, bconv, pool, wclf_t, bclf)
    return out[:B]


# ------------------------------- parameters --------------------------------

class Params:
    pass


def init_params(key, *, C=4, T=16, F1=8, F2=8, kT=5, P=4, n_classes=4):
    """Deterministic synthetic parameters (shapes follow the PyTorch module)."""
    keys = jax.random.split(key, 6)
    p = Params()
    p.C, p.T, p.F1, p.F2, p.kT, p.P, p.n_classes = C, T, F1, F2, kT, P, n_classes
    Tconv = T - kT + 1                 # after temporal conv (valid)
    Tpool = Tconv // P                 # after avg pool (remainder dropped)
    p.Tconv, p.Tpool = Tconv, Tpool
    p.num_hidden = F2 * Tpool          # embedding_net.num_hidden
    # conv_time: Conv2d(1, F1, kernel=(1, kT))
    p.w_time = 0.1 * jax.random.normal(keys[0], (F1, 1, 1, kT), jnp.float32)
    p.b_time = 0.1 * jax.random.normal(keys[1], (F1,), jnp.float32)
    # conv_spat: Conv2d(F1, F2, kernel=(C, 1))
    p.w_spat = 0.1 * jax.random.normal(keys[2], (F2, F1, C, 1), jnp.float32)
    p.b_spat = 0.1 * jax.random.normal(keys[3], (F2,), jnp.float32)
    # clf: Linear(num_hidden, n_classes)
    p.w_clf = 0.1 * jax.random.normal(keys[4], (n_classes, p.num_hidden), jnp.float32)
    p.b_clf = 0.1 * jax.random.normal(keys[5], (n_classes,), jnp.float32)
    return p


def prepare_fused_params(p):
    """One-time wrapper-side precompute of the fused/structured weights."""
    C, T, F2, kT, P = p.C, p.T, p.F2, p.kT, p.P
    Tconv, Tpool = p.Tconv, p.Tpool

    w_time2 = p.w_time[:, 0, 0, :]                       # (F1, kT)
    w_spat2 = p.w_spat[:, :, :, 0]                       # (F2, F1, C)

    # Algebraic fusion of conv_time + conv_spat (no nonlinearity in between).
    w_comb = jnp.einsum('fgc,gk->fck', w_spat2, w_time2, precision=_HIGH)  # (F2,C,kT)
    b_comb = p.b_spat + jnp.einsum('fgc,g->f', w_spat2, p.b_time, precision=_HIGH)

    # Toeplitz matrix: (x2d @ wconv)[b, f*Tconv+t] = sum_{c,k} w_comb[f,c,k]*x[b,c,t+k]
    s_idx = jnp.arange(T)
    t_idx = jnp.arange(Tconv)
    kmat = s_idx[:, None] - t_idx[None, :]               # (T, Tconv)
    valid = (kmat >= 0) & (kmat < kT)
    kcl = jnp.clip(kmat, 0, kT - 1)
    wt4 = jnp.where(valid[None, None], w_comb[:, :, kcl], 0.0)   # (F2,C,T,Tconv)
    wconv = wt4.transpose(1, 2, 0, 3).reshape(C * T, F2 * Tconv)
    bconv = jnp.repeat(b_comb, Tconv)[None, :]                   # (1, F2*Tconv)

    # Block-diagonal average-pool matrix (drops the remainder like AvgPool2d).
    pm = ((jnp.arange(Tconv)[:, None] // P)
          == jnp.arange(Tpool)[None, :]).astype(jnp.float32) / P  # (Tconv,Tpool)
    pool = jnp.kron(jnp.eye(F2, dtype=jnp.float32), pm)           # (F2*Tconv, F2*Tpool)

    return dict(
        wconv=wconv.astype(jnp.float32),
        bconv=bconv.astype(jnp.float32),
        pool=pool.astype(jnp.float32),
        wclf_t=p.w_clf.T.astype(jnp.float32),                     # (num_hidden, n_cls)
        bclf=p.b_clf[None, :].astype(jnp.float32),                # (1, n_cls)
    )


# --------------------------- model forward (glue) ---------------------------

def fc_clf_net_forward(x, p, fp):
    """x: (B, 1, C, T) NCHW float32 -> logits (B, n_classes) (after squeeze)."""
    B = x.shape[0]
    x2d = x[:, 0].reshape(B, p.C * p.T).astype(jnp.float32)   # (B, C*T)
    logits = fused_forward(x2d, fp)                           # (B, n_classes)
    # TODO(synk): nn.Dropout() is identity in eval mode; training-mode dropout not applied.
    out = logits.reshape(B, p.n_classes, -1)                  # (B, n_classes, 1)
    if out.shape[2] == 1:
        out = jnp.squeeze(out)                                # matches torch .squeeze()
    return out


def reference_forward(x, p):
    """Plain-JAX reference (unfused two-conv path) for numerical validation."""
    B = x.shape[0]
    C, T, F2, kT, P = p.C, p.T, p.F2, p.kT, p.P
    Tconv, Tpool = p.Tconv, p.Tpool
    xt = x[:, 0]                                              # (B, C, T)
    w_time2 = p.w_time[:, 0, 0, :]
    w_spat2 = p.w_spat[:, :, :, 0]
    win = jnp.stack([xt[:, :, k:k + Tconv] for k in range(kT)], axis=-1)
    y1 = jnp.einsum('bctk,fk->bfct', win, w_time2, precision=_HIGH)
    y1 = y1 + p.b_time[None, :, None, None]
    y2 = jnp.einsum('bfct,gfc->bgt', y1, w_spat2, precision=_HIGH)
    y2 = y2 + p.b_spat[None, :, None]                         # (B, F2, Tconv)
    sq = y2 * y2
    pooled = sq[:, :, :Tpool * P].reshape(B, F2, Tpool, P).mean(axis=-1)
    feat = jnp.log(pooled + _EPS).reshape(B, F2 * Tpool)
    logits = jnp.dot(feat, p.w_clf.T, precision=_HIGH) + p.b_clf
    out = logits.reshape(B, p.n_classes, -1)
    if out.shape[2] == 1:
        out = jnp.squeeze(out)
    return out


# ---------------------------------- main -----------------------------------

if __name__ == "__main__":
    key = jax.random.PRNGKey(0)
    k_param, k_x = jax.random.split(key)

    params = init_params(k_param, C=4, T=16, F1=8, F2=8, kT=5, P=4, n_classes=4)
    fused_params = prepare_fused_params(params)

    # Input: (batch=2, in_channels=1, EEG electrodes=4, time=16), NCHW.
    x = jax.random.normal(k_x, (2, 1, 4, 16), jnp.float32)

    out = fc_clf_net_forward(x, params, fused_params)
    out = jax.block_until_ready(out)

    ref = jax.block_until_ready(reference_forward(x, params))

    assert out.shape == (2, params.n_classes), out.shape
    assert bool(jnp.all(jnp.isfinite(out)))
    assert jnp.allclose(out, ref, atol=5e-3, rtol=5e-3), (out, ref)
    print("KERNEL_OK")
</pallas_src>

<mosaic_0001>
module attributes {stable_mosaic.version = 11 : i64} {
  func.func @_fused_fwd_kernel(%arg0: i32, %arg1: memref<2x64xf32, #tpu.memory_space<vmem>>, %arg2: memref<64x96xf32, #tpu.memory_space<vmem>>, %arg3: memref<1x96xf32, #tpu.memory_space<vmem>>, %arg4: memref<96x24xf32, #tpu.memory_space<vmem>>, %arg5: memref<24x4xf32, #tpu.memory_space<vmem>>, %arg6: memref<1x4xf32, #tpu.memory_space<vmem>>, %arg7: memref<2x4xf32, #tpu.memory_space<vmem>>) attributes {dimension_semantics = [#tpu.dimension_semantics<parallel>], iteration_bounds = array<i64: 1>, scalar_prefetch = 0 : i64, scratch_operands = 0 : i64, tpu.core_type = #tpu.core_type<tc>, window_params = [{transform_indices = @transform_0, window_bounds = array<i64: 2, 64>}, {pipeline_mode = #tpu.pipeline_mode<synchronous>, transform_indices = @transform_1, window_bounds = array<i64: 64, 96>}, {pipeline_mode = #tpu.pipeline_mode<synchronous>, transform_indices = @transform_2, window_bounds = array<i64: 1, 96>}, {pipeline_mode = #tpu.pipeline_mode<synchronous>, transform_indices = @transform_3, window_bounds = array<i64: 96, 24>}, {pipeline_mode = #tpu.pipeline_mode<synchronous>, transform_indices = @transform_4, window_bounds = array<i64: 24, 4>}, {pipeline_mode = #tpu.pipeline_mode<synchronous>, transform_indices = @transform_5, window_bounds = array<i64: 1, 4>}, {transform_indices = @transform_6, window_bounds = array<i64: 2, 4>}]} {
    %c0 = arith.constant 0 : index
    %c0_0 = arith.constant 0 : index
    %0 = vector.load %arg1[%c0, %c0_0] : memref<2x64xf32, #tpu.memory_space<vmem>>, vector<2x64xf32>
    %c0_1 = arith.constant 0 : index
    %c0_2 = arith.constant 0 : index
    %1 = vector.load %arg2[%c0_1, %c0_2] : memref<64x96xf32, #tpu.memory_space<vmem>>, vector<64x96xf32>
    %cst = arith.constant dense<0.000000e+00> : vector<2x96xf32>
    %2 = tpu.matmul %0, %1, %cst {dimension_numbers = #tpu.dot_dimension_numbers<[1], [0], [0], [1], [0, 0, 1, 1], [], []>} : vector<2x64xf32>, vector<64x96xf32>, vector<2x96xf32> -> vector<2x96xf32>
    %c0_3 = arith.constant 0 : index
    %c0_4 = arith.constant 0 : index
    %3 = vector.load %arg3[%c0_3, %c0_4] : memref<1x96xf32, #tpu.memory_space<vmem>>, vector<1x96xf32>
    %4 = vector.broadcast %3 : vector<1x96xf32> to vector<2x96xf32>
    %5 = arith.addf %2, %4 : vector<2x96xf32>
    %6 = arith.mulf %5, %5 : vector<2x96xf32>
    %c0_5 = arith.constant 0 : index
    %c0_6 = arith.constant 0 : index
    %7 = vector.load %arg4[%c0_5, %c0_6] : memref<96x24xf32, #tpu.memory_space<vmem>>, vector<96x24xf32>
    %cst_7 = arith.constant dense<0.000000e+00> : vector<2x24xf32>
    %8 = tpu.matmul %6, %7, %cst_7 {dimension_numbers = #tpu.dot_dimension_numbers<[1], [0], [0], [1], [0, 0, 1, 1], [], []>} : vector<2x96xf32>, vector<96x24xf32>, vector<2x24xf32> -> vector<2x24xf32>
    %cst_8 = arith.constant 9.99999997E-7 : f32
    %9 = vector.broadcast %cst_8 : f32 to vector<2x24xf32>
    %10 = arith.addf %8, %9 : vector<2x24xf32>
    %11 = math.log %10 : vector<2x24xf32>
    %c0_9 = arith.constant 0 : index
    %c0_10 = arith.constant 0 : index
    %12 = vector.load %arg5[%c0_9, %c0_10] : memref<24x4xf32, #tpu.memory_space<vmem>>, vector<24x4xf32>
    %cst_11 = arith.constant dense<0.000000e+00> : vector<2x4xf32>
    %13 = tpu.matmul %11, %12, %cst_11 {dimension_numbers = #tpu.dot_dimension_numbers<[1], [0], [0], [1], [0, 0, 1, 1], [], []>} : vector<2x24xf32>, vector<24x4xf32>, vector<2x4xf32> -> vector<2x4xf32>
    %c0_12 = arith.constant 0 : index
    %c0_13 = arith.constant 0 : index
    %14 = vector.load %arg6[%c0_12, %c0_13] : memref<1x4xf32, #tpu.memory_space<vmem>>, vector<1x4xf32>
    %15 = vector.broadcast %14 : vector<1x4xf32> to vector<2x4xf32>
    %16 = arith.addf %13, %15 : vector<2x4xf32>
    %c0_14 = arith.constant 0 : index
    %c0_15 = arith.constant 0 : index
    %17 = vector.load %arg7[%c0_14, %c0_15] : memref<2x4xf32, #tpu.memory_space<vmem>>, vector<2x4xf32>
    tpu.vector_store %arg7[%c0_14, %c0_15], %16 {strides = array<i32>} : memref<2x4xf32, #tpu.memory_space<vmem>>, vector<2x4xf32>,
    return
  }
  func.func @transform_0(%arg0: i32) -> (i32, i32) {
    %c0_i32 = arith.constant 0 : i32
    %c0_i32_0 = arith.constant 0 : i32
    return %arg0, %c0_i32 : i32, i32
  }
  func.func @transform_1(%arg0: i32) -> (i32, i32) {
    %c0_i32 = arith.constant 0 : i32
    %c0_i32_0 = arith.constant 0 : i32
    %c0_i32_1 = arith.constant 0 : i32
    return %c0_i32, %c0_i32_0 : i32, i32
  }
  func.func @transform_2(%arg0: i32) -> (i32, i32) {
    %c0_i32 = arith.constant 0 : i32
    %c0_i32_0 = arith.constant 0 : i32
    %c0_i32_1 = arith.constant 0 : i32
    return %c0_i32, %c0_i32_0 : i32, i32
  }
  func.func @transform_3(%arg0: i32) -> (i32, i32) {
    %c0_i32 = arith.constant 0 : i32
    %c0_i32_0 = arith.constant 0 : i32
    %c0_i32_1 = arith.constant 0 : i32
    return %c0_i32, %c0_i32_0 : i32, i32
  }
  func.func @transform_4(%arg0: i32) -> (i32, i32) {
    %c0_i32 = arith.constant 0 : i32
    %c0_i32_0 = arith.constant 0 : i32
    %c0_i32_1 = arith.constant 0 : i32
    return %c0_i32, %c0_i32_0 : i32, i32
  }
  func.func @transform_5(%arg0: i32) -> (i32, i32) {
    %c0_i32 = arith.constant 0 : i32
    %c0_i32_0 = arith.constant 0 : i32
    %c0_i32_1 = arith.constant 0 : i32
    return %c0_i32, %c0_i32_0 : i32, i32
  }
  func.func @transform_6(%arg0: i32) -> (i32, i32) {
    %c0_i32 = arith.constant 0 : i32
    %c0_i32_0 = arith.constant 0 : i32
    return %arg0, %c0_i32 : i32, i32
  }
}

</mosaic_0001>

<bundles_post_ra>
// kernel: tpu_custom_call.1
= control target key start
LH: loop header
LB: loop body
LE: loop exit
PB: predicated region body
PF: predicated region fallthrough
CT: control target
= control target key end

     0   :  { %s300_s0 = inlined_call_operand.vmem [shape: f32[2,64], index: 0, kind: input, shape index: {}]   ;;  %s301_s1 = inlined_call_operand.vmem [shape: f32[64,96], index: 1, kind: input, shape index: {}]   ;;  %s302_s2 = inlined_call_operand.vmem [shape: f32[1,96], index: 2, kind: input, shape index: {}]   ;;  %s303_s3 = inlined_call_operand.vmem [shape: f32[96,24], index: 3, kind: input, shape index: {}]   ;;  %s304_s4 = inlined_call_operand.vmem [shape: f32[24,4], index: 4, kind: input, shape index: {}]   ;;  %s305_s5 = inlined_call_operand.vmem [shape: f32[1,4], index: 5, kind: input, shape index: {}]   ;;  %s306_s6 = inlined_call_operand.hbm [shape: f32[2,4], index: 6, kind: output, shape index: {}]  }
   0x1   :  { %v32_v0 = vld [vmem:[%s301_s1 + $0x38] sm:$0xff]  ;;  %v31_v1 = vld [vmem:[%s301_s1 + $0x30] sm:$0xff]  ;;  %v30_v2 = vld [vmem:[%s301_s1 + $0x28] sm:$0xff] }
   0x2   :  { %49 = vmatpush.msra.mxu0 %v32_v0  ;;  %v73_v3 = vld [vmem:[%s303_s3 + $0x58] sm:$0xff]  ;;  %v72_v4 = vld [vmem:[%s303_s3 + $0x50] sm:$0xff]  ;;  %v29_v5 = vld [vmem:[%s301_s1 + $0x20] sm:$0xff] }
   0x3   :  { %82 = vmatpush.msra.mxu1 %v73_v3  ;;  %v71_v6 = vld [vmem:[%s303_s3 + $0x48] sm:$0xff]  ;;  %v28_v7 = vld [vmem:[%s301_s1 + $0x18] sm:$0xff]  ;;  %v70_v8 = vld [vmem:[%s303_s3 + $0x40] sm:$0xff] }
   0x4   :  { %50 = vmatpush.msra.mxu0 %v31_v1 }
   0x5   :  { %83 = vmatpush.msra.mxu1 %v72_v4 }
   0x6   :  { %51 = vmatpush.msra.mxu0 %v30_v2 }
   0x8   :  { %52 = vmatpush.msra.mxu0 %v29_v5 }
   0x9   :  { %11 = vsyncpa [#allocation3], 0  ;;  %v27_v9 = vld [vmem:[%s301_s1 + $0x10] sm:$0xff]  ;;  %84 = vmatpush.msra.mxu1 %v71_v6  ;;  %v69_v10 = vld [vmem:[%s303_s3 + $0x38] sm:$0xff]  ;;  %vm37_vm0 = vcmask 523264   ;;  %vm74_vm1 = vcmask 785408  }
   0xa   :  { %53 = vmatpush.msra.mxu0 %v28_v7  ;;  %v26_v11 = vld [vmem:[%s301_s1 + $0x8] sm:$0xff]  ;;  %v68_v12 = vld [vmem:[%s303_s3 + $0x30] sm:$0xff]  ;;  %v25_v13 = vld [vmem:[%s301_s1] sm:$0xff]  ;;  %vm107_vm2 = vcmask 195584   ;;  %s183_s21 = smov [#allocation2]   ;;  %s140_s25 = sshll.u32 %s306_s6, 4  ;;  %s141_s25 = int_to_ptr.hbm [resolvable:$true] %s140_s25 }
   0xb   :  { %85 = vmatpush.msra.mxu1 %v70_v8  ;;  %v24_v14 = vld [vmem:[%s300_s0] sm:$0x3]  ;;  %v67_v15 = vld [vmem:[%s303_s3 + $0x28] sm:$0xff]  ;;  %v65_v17 = vld [vmem:[%s303_s3 + $0x18] sm:$0xff]  ;;  %s138_s22 = sshll.u32 %s183_s21, 4  ;;  %vm131_vm3 = vcmask 25600   ;;  %s139_s22 = int_to_ptr.vmem [resolvable:$true] %s138_s22 }
   0xc   :  { %54 = vmatpush.msra.mxu0 %v27_v9  ;;  %v66_v16 = vld [vmem:[%s303_s3 + $0x20] sm:$0xff]  ;;  %v64_v18 = vld [vmem:[%s303_s3 + $0x10] sm:$0xff]  ;;  %v63_v19 = vld [vmem:[%s303_s3 + $0x8] sm:$0xff] }
   0xd   :  { %86 = vmatpush.msra.mxu1 %v69_v10  ;;  %v62_v20 = vld [vmem:[%s303_s3] sm:$0xff]  ;;  %v102_v25 = vld [vmem:[%s304_s4 + $0x10] sm:$0xff]  ;;  %v101_v26 = vld [vmem:[%s304_s4 + $0x8] sm:$0xff] }
   0xe   :  { %55 = vmatpush.msra.mxu0 %v26_v11  ;;  %v153_v21 = vld [vmem:[%s302_s2] ss:$0 sm:$0xff]  ;;  %124 = vmatpush.msra.mxu2 %v102_v25 }
   0xf   :  { %87 = vmatpush.msra.mxu1 %v68_v12  ;;  %v100_v27 = vld [vmem:[%s304_s4] sm:$0xff] }
  0x10   :  { %56 = vmatpush.msra.mxu0 %v25_v13  ;;  %125 = vmatpush.msra.mxu2 %v101_v26  ;;  %v154_v32 = vld [vmem:[%s305_s5] ss:$0 sm:$0xff] }
  0x11   :  { %149 = vmatmul.msk.f32.vlgmr.msra.gmra.mxu0 %vm37_vm0, %v24_v14  ;;  %88 = vmatpush.msra.mxu1 %v67_v15 }
  0x12   :  { %126 = vmatpush.msra.mxu2 %v100_v27 }
  0x13   :  { %89 = vmatpush.msra.mxu1 %v66_v16 }
  0x15   :  { %90 = vmatpush.msra.mxu1 %v65_v17 }
  0x17   :  { %91 = vmatpush.msra.mxu1 %v64_v18 }
  0x19   :  { %92 = vmatpush.msra.mxu1 %v63_v19 }
  0x1b   :  { %93 = vmatpush.msra.mxu1 %v62_v20 }
  0x8e   :  { %v58_v22 = vpop.f32.mrf.mxu0 }
  0x8f   :  { %v59_v23 = vadd.f32 %v153_v21, %v58_v22 }
  0x91   :  { %v61_v24 = vmul.f32 %v59_v23, %v59_v23 }
  0x93   :  { %150 = vmatmul.msk.f32.vlgmr.msra.gmra.mxu1 %vm74_vm1, %v61_v24 }
 0x110   :  { %v95_v28 = vpop.f32.mrf.mxu1 }
 0x111   :  { %v96_v29 = vadd.f32 1e-06, %v95_v28 }
 0x113   :  { %155 = vlog2.f32 %v96_v29 }
 0x119   :  { %v156_v30 = vpop.eup %155 }
 0x11a   :  { %v99_v31 = vmul.f32 0.6931472, %v156_v30 }
 0x11c   :  { %151 = vmatmul.msk.f32.vlgmr.msra.gmra.mxu2 %vm107_vm2, %v99_v31 }
 0x19f   :  { %v128_v33 = vpop.f32.mrf.mxu2 }
 0x1a0   :  { %v129_v34 = vadd.f32 %v154_v32, %v128_v33 }
 0x1a2   :  { %132 = vst.msk [vmem:[#allocation2] sm:$0x3] %vm131_vm3, %v129_v34 }
 0x1a3   :  { %143 = dma.vmem_to_hbm [thread:$0]  %s139_s22, 32, %s141_s25, [#allocation3]  }
 0x1a4   :  { %181 = dma.done.wait [#allocation3], 32  }
 0x1a5   :  { %182 = vsyncadd [#allocation3], 4294967264 }
 0x1a6   :  { %148 = vsyncpa [#allocation3], 1 }

</bundles_post_ra>
